<compile_context>
chip_gen: v6e
topology: v6e:2x2x1
jax: 0.10.0
libtpu: 0.0.40
codegen_flags: <defaults>
</compile_context>

<pallas_src>
import functools

import jax
import jax.numpy as jnp
import numpy as np
from jax.experimental import pallas as pl
from jax.experimental.pallas import tpu as pltpu

_LANE = 128
_SUBLANE = 8
_MAX_TILE_ROWS = 2048   # ~1 MiB per f32 stream per tile; ~13 MiB double-buffered


def _round_up(x, m):
    return ((x + m - 1) // m) * m


def _vmem_limit(tile_rows, x_itemsize, out_itemsize, seq):
    per = tile_rows * _LANE
    need = 2 * per * (x_itemsize + out_itemsize + 4 * 4)   # double-buffered streams
    if seq:
        need += 2 * per * 4                                # persistent q/acc scratch
    need += 4 * _SUBLANE * _LANE * 4                       # flag buffers
    need += 2 << 20                                        # headroom
    return int(min(48 << 20, max(32 << 20, 2 * need)))


# ------------------------------ Pallas kernels -------------------------------
def _if_step_kernel(x_ref, q_ref, acc_ref, out_ref, q_out_ref, acc_out_ref,
                    flag_ref, *, thr):
    """Single-timestep fused IF-neuron update on one (tile_rows, 128) block."""
    x_raw = x_ref[...].astype(jnp.float32)
    x_scaled = x_raw / thr                       # exact divide: matches torch input / q_threshold
    q_new = q_ref[...] + x_scaled                # q += x
    spike = (q_new - 1.0) >= 0.0                 # q - 1 >= 0
    spike_f = spike.astype(jnp.float32)
    acc_out_ref[...] = jnp.round(acc_ref[...]) + spike_f          # acc = round(acc) + cur
    q_out_ref[...] = q_new - spike_f                              # q[spike] -= 1
    out_ref[...] = jnp.where(spike, thr, 0.0).astype(out_ref.dtype)  # cur * thr
    # in-kernel is_work flag: any nonzero input or any spike in this tile.
    active = jnp.logical_or(spike, x_raw != 0.0).astype(jnp.float32)
    flag_ref[...] = jnp.broadcast_to(
        jnp.max(active, axis=0, keepdims=True), flag_ref.shape)


def _if_seq_kernel(x_ref, q_ref, acc_ref, out_ref, q_out_ref, acc_out_ref,
                   flag_ref, q_st, acc_st, *, thr):
    """T fused timesteps; q/acc stay VMEM-resident across the inner t axis."""
    t = pl.program_id(1)

    @pl.when(t == 0)
    def _():                                     # load persistent state once per tile
        q_st[...] = q_ref[...]
        acc_st[...] = acc_ref[...]

    x_raw = x_ref[0].astype(jnp.float32)
    x_scaled = x_raw / thr
    q_new = q_st[...] + x_scaled
    spike = (q_new - 1.0) >= 0.0
    spike_f = spike.astype(jnp.float32)
    acc_st[...] = jnp.round(acc_st[...]) + spike_f
    q_st[...] = q_new - spike_f
    out_ref[0] = jnp.where(spike, thr, 0.0).astype(out_ref.dtype)
    active = jnp.logical_or(spike, x_raw != 0.0).astype(jnp.float32)
    flag_ref[0] = jnp.broadcast_to(
        jnp.max(active, axis=0, keepdims=True), (_SUBLANE, _LANE))

    @pl.when(t == pl.num_programs(1) - 1)
    def _():                                     # write state back once per tile
        q_out_ref[...] = q_st[...]
        acc_out_ref[...] = acc_st[...]


# ------------------------------ jitted wrappers -------------------------------
@functools.partial(jax.jit, static_argnames=("q_threshold", "tile_rows"),
                   donate_argnums=(1, 2))
def _if_neuron_step(x2d, q, acc, *, q_threshold, tile_rows):
    """x2d: (rows, 128) activation; q, acc: (rows, 128) f32 state (donated)."""
    rows, lanes = x2d.shape
    num_tiles = rows // tile_rows
    out_dtype = x2d.dtype
    kernel = functools.partial(_if_step_kernel, thr=float(q_threshold))

    blk = pl.BlockSpec((tile_rows, lanes), lambda i: (i, 0))
    flag_blk = pl.BlockSpec((_SUBLANE, lanes), lambda i: (i, 0))
    nbytes = rows * lanes * (2 * x2d.dtype.itemsize + 4 * 4)

    out, q_new, acc_new, flags = pl.pallas_call(
        kernel,
        out_shape=(
            jax.ShapeDtypeStruct((rows, lanes), out_dtype),
            jax.ShapeDtypeStruct((rows, lanes), jnp.float32),
            jax.ShapeDtypeStruct((rows, lanes), jnp.float32),
            jax.ShapeDtypeStruct((num_tiles * _SUBLANE, lanes), jnp.float32),
        ),
        grid_spec=pltpu.PrefetchScalarGridSpec(
            num_scalar_prefetch=0,
            grid=(num_tiles,),
            in_specs=[blk, blk, blk],
            out_specs=[blk, blk, blk, flag_blk],
        ),
        compiler_params=pltpu.CompilerParams(
            dimension_semantics=("parallel",),
            vmem_limit_bytes=_vmem_limit(tile_rows, x2d.dtype.itemsize,
                                         out_dtype.itemsize, seq=False),
        ),
        input_output_aliases={1: 1, 2: 2},   # q -> q_new, acc -> acc_new in place
        cost_estimate=pl.CostEstimate(flops=6 * rows * lanes, transcendentals=0,
                                      bytes_accessed=nbytes),
    )(x2d, q, acc)

    is_work = jnp.any(flags != 0.0)          # tiny reduction over per-tile flags
    return out, q_new, acc_new, is_work


@functools.partial(jax.jit, static_argnames=("q_threshold", "tile_rows"),
                   donate_argnums=(1, 2))
def _if_neuron_seq(x3d, q, acc, *, q_threshold, tile_rows):
    """x3d: (T, rows, 128); q, acc: (rows, 128) f32 state (donated).
    State stays VMEM-resident across the T inner grid steps."""
    T, rows, lanes = x3d.shape
    num_tiles = rows // tile_rows
    out_dtype = x3d.dtype
    kernel = functools.partial(_if_seq_kernel, thr=float(q_threshold))

    x_blk = pl.BlockSpec((1, tile_rows, lanes), lambda i, t: (t, i, 0))
    st_blk = pl.BlockSpec((tile_rows, lanes), lambda i, t: (i, 0))
    flag_blk = pl.BlockSpec((1, _SUBLANE, lanes), lambda i, t: (t, i, 0))

    nbytes = (T * rows * lanes * (x3d.dtype.itemsize + out_dtype.itemsize)
              + 4 * rows * lanes * 4)

    out, q_new, acc_new, flags = pl.pallas_call(
        kernel,
        out_shape=(
            jax.ShapeDtypeStruct((T, rows, lanes), out_dtype),
            jax.ShapeDtypeStruct((rows, lanes), jnp.float32),
            jax.ShapeDtypeStruct((rows, lanes), jnp.float32),
            jax.ShapeDtypeStruct((T, num_tiles * _SUBLANE, lanes), jnp.float32),
        ),
        grid_spec=pltpu.PrefetchScalarGridSpec(
            num_scalar_prefetch=0,
            grid=(num_tiles, T),
            in_specs=[x_blk, st_blk, st_blk],
            out_specs=[x_blk, st_blk, st_blk, flag_blk],
            scratch_shapes=[pltpu.VMEM((tile_rows, lanes), jnp.float32),
                            pltpu.VMEM((tile_rows, lanes), jnp.float32)],
        ),
        compiler_params=pltpu.CompilerParams(
            dimension_semantics=("parallel", "arbitrary"),
            vmem_limit_bytes=_vmem_limit(tile_rows, x3d.dtype.itemsize,
                                         out_dtype.itemsize, seq=True),
        ),
        input_output_aliases={1: 1, 2: 2},
        cost_estimate=pl.CostEstimate(flops=6 * T * rows * lanes, transcendentals=0,
                                      bytes_accessed=nbytes),
    )(x3d, q, acc)

    step_work = jnp.any(flags != 0.0, axis=(1, 2))   # per-timestep is_work
    return out, q_new, acc_new, step_work


# ------------------------------ module wrapper --------------------------------
class ORIIFNeuronPallas:
    """JAX/Pallas port of ORIIFNeuron. Stateful bookkeeping lives in Python;
    the per-timestep elementwise update runs as a single fused Pallas kernel.
    `forward_sequence` additionally fuses T timesteps into one pallas_call."""

    def __init__(self, q_threshold, level, sym=False):
        self.q_threshold = float(q_threshold)
        self.level = level
        self.sym = sym
        self.pos_max = level - 1
        self.neg_min = 0
        self.eps = 0
        self.is_work = False
        self._reset_state()

    # ---- internal state (padded, lane-dense (rows_pad, 128) layout) ----
    def _reset_state(self):
        self._q2d = None
        self._acc2d = None
        self._shape = None
        self._n = None
        self._rows_pad = None
        self._tile_rows = None

    def reset(self):
        self.is_work = False
        self._reset_state()

    @staticmethod
    def _choose_tiling(n, itemsize):
        # dtype-aware sublane quantum: 8 (f32), 16 (bf16), 32 (int8/fp8)
        sub = max(_SUBLANE, 32 // max(1, int(itemsize)))
        rows = max(1, -(-n // _LANE))
        if rows <= sub:
            return rows, rows                      # single block == full array dims
        rows_pad = _round_up(rows, sub)
        # at least 2 tiles so both TensorCores get work on megacore parts (v7x)
        num_tiles = max(2, -(-rows_pad // _MAX_TILE_ROWS))
        tile_rows = _round_up(-(-rows_pad // num_tiles), sub)
        rows_pad = tile_rows * num_tiles
        return rows_pad, tile_rows

    def _init_state(self, shape, dtype):
        self._shape = tuple(shape)
        self._n = int(np.prod(shape))
        self._rows_pad, self._tile_rows = self._choose_tiling(
            self._n, np.dtype(dtype).itemsize)
        full = (self._rows_pad, _LANE)
        # q starts at 0.5, acc_q at 0 (matches torch init). Padded elements never
        # receive input, never spike, and never affect results or is_work.
        self._q2d = jnp.full(full, 0.5, dtype=jnp.float32)
        self._acc2d = jnp.zeros(full, dtype=jnp.float32)

    # ---- views of state in the logical shape (for inspection/parity) ----
    @property
    def q(self):
        if self._q2d is None:
            return 0.0
        return self._q2d.reshape(-1)[: self._n].reshape(self._shape)

    @property
    def acc_q(self):
        if self._acc2d is None:
            return 0.0
        return self._acc2d.reshape(-1)[: self._n].reshape(self._shape)

    def _pack(self, x_flat, rows_pad, n):
        if rows_pad * _LANE != n:
            pad = rows_pad * _LANE - n
            x_flat = jnp.pad(x_flat, [(0, 0)] * (x_flat.ndim - 1) + [(0, pad)])
        return x_flat

    def __call__(self, x):
        x = jnp.asarray(x)
        if self._q2d is None or x.shape != self._shape:
            self._init_state(x.shape, x.dtype)
        n, rows_pad = self._n, self._rows_pad
        x2d = self._pack(x.reshape(-1), rows_pad, n).reshape(rows_pad, _LANE)

        out2d, q_new, acc_new, is_work = _if_neuron_step(
            x2d, self._q2d, self._acc2d,
            q_threshold=self.q_threshold, tile_rows=self._tile_rows)

        self._q2d = q_new
        self._acc2d = acc_new
        self.is_work = is_work            # device bool scalar; no forced host sync

        out = out2d.reshape(-1)
        if out.shape[0] != n:
            out = out[:n]
        return out.reshape(self._shape)

    def forward_sequence(self, x_seq):
        """Fused T-step path: x_seq has shape (T, *step_shape)."""
        x_seq = jnp.asarray(x_seq)
        T = x_seq.shape[0]
        step_shape = tuple(x_seq.shape[1:])
        if self._q2d is None or step_shape != self._shape:
            self._init_state(step_shape, x_seq.dtype)
        n, rows_pad = self._n, self._rows_pad
        x3d = self._pack(x_seq.reshape(T, -1), rows_pad, n).reshape(T, rows_pad, _LANE)

        out3d, q_new, acc_new, step_work = _if_neuron_seq(
            x3d, self._q2d, self._acc2d,
            q_threshold=self.q_threshold, tile_rows=self._tile_rows)

        self._q2d = q_new
        self._acc2d = acc_new
        self.is_work = step_work[-1]      # torch semantics: is_work of the last step

        out = out3d.reshape(T, -1)
        if out.shape[1] != n:
            out = out[:, :n]
        return out.reshape((T,) + self._shape)


# ----------------------------- pure-numpy reference ---------------------------
def _ref_step(x, q, acc, thr):
    xs = x / thr
    q = q + xs
    spike = (q - 1.0) >= 0.0
    cur = spike.astype(x.dtype)
    acc = np.round(acc) + spike.astype(np.float32)
    q = q - spike.astype(np.float32)
    out = cur * thr
    is_work = bool((x != 0).any() or (cur != 0).any())
    return out, q, acc, is_work


# ----------------------------------- main --------------------------------------
if __name__ == "__main__":
    key = jax.random.PRNGKey(0)
    B, C, H, W = 2, 4, 16, 16             # 2048 elements -> (16, 128) lane-dense
    q_threshold = 0.35
    level = 8

    keys = jax.random.split(key, 2)
    steps = [
        jax.random.uniform(keys[0], (B, C, H, W), jnp.float32, 0.0, 1.0),
        jax.random.uniform(keys[1], (B, C, H, W), jnp.float32, 0.0, 1.0),
        jnp.zeros((B, C, H, W), jnp.float32),   # residual potential may still spike
    ]

    # --- per-step path (matches the torch forward: one call per timestep) ---
    neuron = ORIIFNeuronPallas(q_threshold, level)
    q_ref = np.full((B, C, H, W), 0.5, dtype=np.float32)
    acc_ref = np.zeros((B, C, H, W), dtype=np.float32)
    for t, x in enumerate(steps):
        out = jax.block_until_ready(neuron(x))
        out_ref, q_ref, acc_ref, is_work_ref = _ref_step(
            np.asarray(x), q_ref, acc_ref, q_threshold)
        np.testing.assert_allclose(np.asarray(out), out_ref, rtol=1e-5, atol=1e-5)
        np.testing.assert_allclose(np.asarray(neuron.q), q_ref, rtol=1e-5, atol=1e-5)
        np.testing.assert_allclose(np.asarray(neuron.acc_q), acc_ref, rtol=0, atol=0)
        assert bool(neuron.is_work) == is_work_ref, f"is_work mismatch at step {t}"

    # --- fused time-loop path (q/acc VMEM-resident across T steps) ---
    neuron_seq = ORIIFNeuronPallas(q_threshold, level)
    x_seq = jnp.stack(steps, axis=0)
    out_seq = jax.block_until_ready(neuron_seq.forward_sequence(x_seq))
    q_ref2 = np.full((B, C, H, W), 0.5, dtype=np.float32)
    acc_ref2 = np.zeros((B, C, H, W), dtype=np.float32)
    for t in range(x_seq.shape[0]):
        out_ref, q_ref2, acc_ref2, is_work_ref = _ref_step(
            np.asarray(x_seq[t]), q_ref2, acc_ref2, q_threshold)
        np.testing.assert_allclose(np.asarray(out_seq[t]), out_ref, rtol=1e-5, atol=1e-5)
    np.testing.assert_allclose(np.asarray(neuron_seq.q), q_ref2, rtol=1e-5, atol=1e-5)
    np.testing.assert_allclose(np.asarray(neuron_seq.acc_q), acc_ref2, rtol=0, atol=0)
    assert bool(neuron_seq.is_work) == is_work_ref, "is_work mismatch (sequence path)"

    # --- non-128-multiple shape exercises the padding / single-tile path ---
    neuron2 = ORIIFNeuronPallas(q_threshold, level)
    x_odd = jax.random.normal(jax.random.PRNGKey(1), (3, 5, 7), jnp.float32)
    q2 = np.full((3, 5, 7), 0.5, dtype=np.float32)
    a2 = np.zeros((3, 5, 7), dtype=np.float32)
    out_odd = jax.block_until_ready(neuron2(x_odd))
    out_odd_ref, _, _, _ = _ref_step(np.asarray(x_odd), q2, a2, q_threshold)
    np.testing.assert_allclose(np.asarray(out_odd), out_odd_ref, rtol=1e-5, atol=1e-5)

    print("KERNEL_OK")
</pallas_src>

<mosaic_0001>
module attributes {stable_mosaic.version = 11 : i64} {
  func.func @_if_step_kernel(%arg0: i32, %arg1: memref<8x128xf32, #tpu.memory_space<vmem>>, %arg2: memref<8x128xf32, #tpu.memory_space<vmem>>, %arg3: memref<8x128xf32, #tpu.memory_space<vmem>>, %arg4: memref<8x128xf32, #tpu.memory_space<vmem>>, %arg5: memref<8x128xf32, #tpu.memory_space<vmem>>, %arg6: memref<8x128xf32, #tpu.memory_space<vmem>>, %arg7: memref<8x128xf32, #tpu.memory_space<vmem>>) attributes {dimension_semantics = [#tpu.dimension_semantics<parallel>], iteration_bounds = array<i64: 2>, scalar_prefetch = 0 : i64, scratch_operands = 0 : i64, tpu.core_type = #tpu.core_type<tc>, window_params = [{transform_indices = @transform_0, window_bounds = array<i64: 8, 128>}, {transform_indices = @transform_1, window_bounds = array<i64: 8, 128>}, {transform_indices = @transform_2, window_bounds = array<i64: 8, 128>}, {transform_indices = @transform_3, window_bounds = array<i64: 8, 128>}, {transform_indices = @transform_4, window_bounds = array<i64: 8, 128>}, {transform_indices = @transform_5, window_bounds = array<i64: 8, 128>}, {transform_indices = @transform_6, window_bounds = array<i64: 8, 128>}]} {
    %c0 = arith.constant 0 : index
    %c0_0 = arith.constant 0 : index
    %0 = vector.load %arg1[%c0, %c0_0] : memref<8x128xf32, #tpu.memory_space<vmem>>, vector<8x128xf32>
    %cst = arith.constant 3.500000e-01 : f32
    %1 = vector.broadcast %cst : f32 to vector<8x128xf32>
    %2 = arith.divf %0, %1 : vector<8x128xf32>
    %c0_1 = arith.constant 0 : index
    %c0_2 = arith.constant 0 : index
    %3 = vector.load %arg2[%c0_1, %c0_2] : memref<8x128xf32, #tpu.memory_space<vmem>>, vector<8x128xf32>
    %4 = arith.addf %3, %2 : vector<8x128xf32>
    %cst_3 = arith.constant 1.000000e+00 : f32
    %5 = vector.broadcast %cst_3 : f32 to vector<8x128xf32>
    %6 = arith.subf %4, %5 : vector<8x128xf32>
    %cst_4 = arith.constant 0.000000e+00 : f32
    %7 = vector.broadcast %cst_4 : f32 to vector<8x128xf32>
    %8 = arith.cmpf oge, %6, %7 : vector<8x128xf32>
    %9 = arith.extui %8 : vector<8x128xi1> to vector<8x128xi32>
    %10 = arith.sitofp %9 : vector<8x128xi32> to vector<8x128xf32>
    %c0_5 = arith.constant 0 : index
    %c0_6 = arith.constant 0 : index
    %11 = vector.load %arg3[%c0_5, %c0_6] : memref<8x128xf32, #tpu.memory_space<vmem>>, vector<8x128xf32>
    %12 = math.roundeven %11 : vector<8x128xf32>
    %13 = arith.addf %12, %10 : vector<8x128xf32>
    %c0_7 = arith.constant 0 : index
    %c0_8 = arith.constant 0 : index
    %14 = vector.load %arg6[%c0_7, %c0_8] : memref<8x128xf32, #tpu.memory_space<vmem>>, vector<8x128xf32>
    tpu.vector_store %arg6[%c0_7, %c0_8], %13 {strides = array<i32>} : memref<8x128xf32, #tpu.memory_space<vmem>>, vector<8x128xf32>,
    %15 = arith.subf %4, %10 : vector<8x128xf32>
    %c0_9 = arith.constant 0 : index
    %c0_10 = arith.constant 0 : index
    %16 = vector.load %arg5[%c0_9, %c0_10] : memref<8x128xf32, #tpu.memory_space<vmem>>, vector<8x128xf32>
    tpu.vector_store %arg5[%c0_9, %c0_10], %15 {strides = array<i32>} : memref<8x128xf32, #tpu.memory_space<vmem>>, vector<8x128xf32>,
    %cst_11 = arith.constant 3.500000e-01 : f32
    %cst_12 = arith.constant 0.000000e+00 : f32
    %17 = vector.broadcast %cst_11 : f32 to vector<8x128xf32>
    %18 = vector.broadcast %cst_12 : f32 to vector<8x128xf32>
    %19 = arith.select %8, %17, %18 : vector<8x128xi1>, vector<8x128xf32>
    %c0_13 = arith.constant 0 : index
    %c0_14 = arith.constant 0 : index
    %20 = vector.load %arg4[%c0_13, %c0_14] : memref<8x128xf32, #tpu.memory_space<vmem>>, vector<8x128xf32>
    tpu.vector_store %arg4[%c0_13, %c0_14], %19 {strides = array<i32>} : memref<8x128xf32, #tpu.memory_space<vmem>>, vector<8x128xf32>,
    %cst_15 = arith.constant 0.000000e+00 : f32
    %21 = vector.broadcast %cst_15 : f32 to vector<8x128xf32>
    %22 = arith.cmpf one, %0, %21 : vector<8x128xf32>
    %23 = arith.ori %8, %22 : vector<8x128xi1>
    %24 = arith.extui %23 : vector<8x128xi1> to vector<8x128xi32>
    %25 = arith.sitofp %24 : vector<8x128xi32> to vector<8x128xf32>
    %cst_16 = arith.constant dense<0xFF800000> : vector<128xf32>
    %26 = vector.multi_reduction <maximumf>, %25, %cst_16 [0] : vector<8x128xf32> to vector<128xf32>
    %27 = vector.shape_cast %26 : vector<128xf32> to vector<1x128xf32>
    %28 = vector.shape_cast %27 : vector<1x128xf32> to vector<1x128xf32>
    %29 = vector.broadcast %28 : vector<1x128xf32> to vector<8x128xf32>
    %c0_17 = arith.constant 0 : index
    %c0_18 = arith.constant 0 : index
    %30 = vector.load %arg7[%c0_17, %c0_18] : memref<8x128xf32, #tpu.memory_space<vmem>>, vector<8x128xf32>
    tpu.vector_store %arg7[%c0_17, %c0_18], %29 {strides = array<i32>} : memref<8x128xf32, #tpu.memory_space<vmem>>, vector<8x128xf32>,
    return
  }
  func.func @transform_0(%arg0: i32) -> (i32, i32) {
    %c0_i32 = arith.constant 0 : i32
    %c0_i32_0 = arith.constant 0 : i32
    return %arg0, %c0_i32 : i32, i32
  }
  func.func @transform_1(%arg0: i32) -> (i32, i32) {
    %c0_i32 = arith.constant 0 : i32
    %c0_i32_0 = arith.constant 0 : i32
    return %arg0, %c0_i32 : i32, i32
  }
  func.func @transform_2(%arg0: i32) -> (i32, i32) {
    %c0_i32 = arith.constant 0 : i32
    %c0_i32_0 = arith.constant 0 : i32
    return %arg0, %c0_i32 : i32, i32
  }
  func.func @transform_3(%arg0: i32) -> (i32, i32) {
    %c0_i32 = arith.constant 0 : i32
    %c0_i32_0 = arith.constant 0 : i32
    return %arg0, %c0_i32 : i32, i32
  }
  func.func @transform_4(%arg0: i32) -> (i32, i32) {
    %c0_i32 = arith.constant 0 : i32
    %c0_i32_0 = arith.constant 0 : i32
    return %arg0, %c0_i32 : i32, i32
  }
  func.func @transform_5(%arg0: i32) -> (i32, i32) {
    %c0_i32 = arith.constant 0 : i32
    %c0_i32_0 = arith.constant 0 : i32
    return %arg0, %c0_i32 : i32, i32
  }
  func.func @transform_6(%arg0: i32) -> (i32, i32) {
    %c0_i32 = arith.constant 0 : i32
    %c0_i32_0 = arith.constant 0 : i32
    return %arg0, %c0_i32 : i32, i32
  }
}

</mosaic_0001>

<bundles_post_ra>
// kernel: _if_neuron_step.1
= control target key start
LH: loop header
LB: loop body
LE: loop exit
PB: predicated region body
PF: predicated region fallthrough
CT: control target
= control target key end

     0   :  { %12 = vsyncpa [#allocation3], 0  ;;  %s832_s0 = inlined_call_operand.hbm [shape: f32[16,128], index: 0, kind: input, shape index: {}]   ;;  %s833_s1 = inlined_call_operand.vmem [shape: f32[16,128], index: 1, kind: input, shape index: {}, may-alias: {1,4}]   ;;  %s834_s2 = inlined_call_operand.vmem [shape: f32[16,128], index: 2, kind: input, shape index: {}, may-alias: {2,5}]   ;;  %s835_s3 = inlined_call_operand.vmem [shape: f32[16,128], index: 3, kind: output, shape index: {0}]   ;;  %s836_s4 = inlined_call_operand.vmem [shape: f32[16,128], index: 4, kind: output, shape index: {1}, may-alias: {1,4}]   ;;  %s837_s5 = inlined_call_operand.vmem [shape: f32[16,128], index: 5, kind: output, shape index: {2}, may-alias: {2,5}]   ;;  %s838_s6 = inlined_call_operand.vmem [shape: f32[16,128], index: 6, kind: output, shape index: {3}]  }
   0x1   :  { %14 = vsyncpa [#allocation3 + $0x1], 0  ;;  %s709_s21 = smov 0   ;;  %s711_s22 = smov 0  }
   0x2   :  { %s713_s23 = smov 0   ;;  %s715_s24 = smov 0  }
   0x3 LB: > { %s728_s25 = sadd.s32 4294967295, %s670_s24   ;;  %s731_s26 = sadd.s32 1, %s670_s24   ;;  %s670_s24 = sphi %s715_s24, %s848_s24   ;;  %s666_s23 = sphi %s713_s23, %s847_s23   ;;  %s662_s22 = sphi %s711_s22, %s846_s22   ;;  %s658_s21 = sphi %s709_s21, %s845_s21  }
   0x4   : > { %s24_s27 = ssub.s32 %s670_s24, %s731_s26  ;;  %s27_s28 = sadd.s32 1, %s666_s23 }
   0x5   : > { %p25_p0 = scmp.eq.s32.totalorder %s24_s27, 0  ;;  %p34_p1 = scmp.ne.s32.totalorder %s666_s23, %s662_s22 }
   0x6   : > { %p35_p2 = scmp.eq.s32.totalorder %s670_s24, 0  ;;  %p40_p3 = scmp.ne.s32.totalorder %s662_s22, %s658_s21 }
   0x7   : > { %s741_s29 = scalar_select %p25_p0, %s666_s23, %s27_s28  }
   0x8   : > { %p36_p4 = por %p35_p2, %p34_p1  ;;  %p41_p5 = scmp.eq.s32.totalorder %s728_s25, 0 }
   0x9   : > { %p574_p6 = scmp.lt.s32.totalorder %s670_s24, 2  ;;  %s220_s7 = sand.u32 1, %s666_s23  }
   0xa   : > { %p745_p7 = por %p41_p5, %p40_p3  ;;  %s545_s8 = sshll.u32 %s220_s7, 3 }
   0xb   : > { %s546_s9 = sshll.u32 %s670_s24, 7  ;;  %s224_s13 = scalar_lea.vmem [#allocation2], %s545_s8 }
   0xc   : > { %s840_s30 = scalar_select %p745_p7, 1, 0 }
   0xd   : > { %s754_s12 = scalar_lea.hbm %s832_s0, %s546_s9  ;;  %s231_s14 = sshll.u32 %s224_s13, 4  ;;  %s756_s14 = int_to_ptr.vmem [resolvable:$true] %s231_s14 }
   0xe   : > { %p758_p8 = pnand %p574_p6, %p36_p4  ;;  %s221_s16 = scalar_lea.sflag [#allocation3], %s220_s7 }
   0xf   : > { %s608_s17 = scalar_lea.hbm %s754_s12, 128  ;;  %s613_s20 = scalar_lea.hbm %s832_s0, 256 }
  0x10   : > { %p609_p11 = scmp.ne.s32.totalorder %s754_s12, %s608_s17  ;;  %p610_p12 = pneg %p758_p8 }
  0x11   : > { %p614_p1 = scmp.lt.s32.totalorder %s754_s12, %s832_s0  ;;  %p615_p2 = scmp.lt.s32.totalorder %s613_s20, %s608_s17 }
  0x12   : > { %p611_p13 = pnand %p610_p12, %p609_p11 }
  0x13   : > { %p616_p3 = por %p615_p2, %p614_p1 }
  0x14   : > { %p612_p0 = pneg %p611_p13 }
  0x16   : > { %p617_p4 = pnand %p616_p3, %p612_p0 }
  0x18   : > { %620 = shalt.err (!%p617_p4)
}
  0x19   : > { %s621_s28 = scalar_lea.vmem %s756_s14, 128  ;;  %s672_s7 = smov [#allocation2]  }
  0x1a   : > { %p622_p5 = scmp.ne.s32.totalorder %s756_s14, %s621_s28  ;;  %s626_s8 = sshll.u32 %s672_s7, 4  ;;  %s627_s8 = int_to_ptr.vmem [resolvable:$false] %s626_s8 }
  0x1b   : > { %s628_s9 = scalar_lea.vmem %s627_s8, 256  ;;  %p629_p13 = scmp.lt.s32.totalorder %s756_s14, %s627_s8 }
  0x1c   : > { %p624_p6 = pnand %p622_p5, %p610_p12  ;;  %p630_p9 = scmp.lt.s32.totalorder %s628_s9, %s621_s28 }
  0x1e   : > { %p625_p11 = pneg %p624_p6  ;;  %p631_p10 = por %p630_p9, %p629_p13 }
  0x20   : > { %p632_p7 = pnand %p631_p10, %p625_p11 }
  0x22   : > { %635 = shalt.err (!%p632_p7)
}
  0x23   : > { %573 = dma.hbm_to_vmem [thread:$0]  (!%p758_p8), %s754_s12, 128, %s756_s14, %s221_s16  }
  0x24   : > { %p842_p0 = scmp.lt.s32.totalorder %s670_s24, 3  ;;  %p843_p1 = scmp.ge.s32.totalorder %s670_s24, 1 }
  0x26   : > { %p251_p12 = pnand %p843_p1, %p842_p0 }
  0x27   : > { %s256_s10 = sand.u32 (!%p251_p12), 1, %s662_s22   ;;  %p844_p9 = scmp.ne.s32.totalorder (!%p251_p12), %s840_s30, 0 }
  0x28   : > { %254 = sbr.rel (%p251_p12) target bundleno = 72 (0x48), region = 32  ;;  %s548_s11 = sshll.u32 (!%p251_p12), %s256_s10, 3 }
  0x29   : > { %s257_s13 = scalar_lea.sflag (!%p251_p12), [#allocation3], %s256_s10  ;;  %s260_s17 = scalar_lea.vmem (!%p251_p12), [#allocation2], %s548_s11 }
  0x2d   : > { %653 = dma.done.wait (%p844_p9), %s257_s13, 128  }
  0x2e   : > { %655 = vsyncadd (%p844_p9), %s257_s13, 4294967168  ;;  %p308_p7 = scmp.lt.s32.totalorder %s728_s25, 1  ;;  %v332_v0 = vld [vmem:[%s260_s17] sm:$0xff]  ;;  %v673_v12 = vmov 0.0  }
  0x2f   : > { %v334_v3 = vmul.f32 2.857143, %v332_v0  ;;  %vm349_vm0 = vcmp.ne.f32.partialorder %v332_v0, 0.0 }
  0x30   : > { %s850_s25 = smov (!%p308_p7, %s728_s25), 1 }
  0x31   : > { %s793_s12 = sshll.u32 %s850_s25, 3 }
  0x32   : > { %s311_s15 = scalar_lea.vmem %s833_s1, %s793_s12  ;;  %s315_s19 = scalar_lea.vmem %s834_s2, %s793_s12 }
  0x33   : > { %v335_v1 = vld [vmem:[%s311_s15] sm:$0xff]  ;;  %s319_s20 = scalar_lea.vmem %s835_s3, %s793_s12  ;;  %s323_s28 = scalar_lea.vmem %s836_s4, %s793_s12 }
  0x34   : > { %v341_v2 = vld [vmem:[%s315_s19] sm:$0xff]  ;;  %v336_v6 = vadd.f32 %v335_v1, %v334_v3  ;;  %s327_s9 = scalar_lea.vmem %s837_s5, %s793_s12  ;;  %s331_s13 = scalar_lea.vmem %s838_s6, %s793_s12 }
  0x35   : > { %v562_v4 = vcvt.f32.s32 %v341_v2  ;;  %v560_v5 = vand.u32 2147483647, %v341_v2  ;;  %v565_v8 = vand.u32 2147483648, %v341_v2 }
  0x36   : > { %v555_v9 = vadd.f32 -1.0, %v336_v6 }
  0x37   : > { %v563_v7 = vcvt.s32.f32 %v562_v4  ;;  %vm561_vm1 = vcmp.lt.f32.partialorder %v560_v5, 8388608.0 }
  0x38   : > { %vm338_vm2 = vcmp.ge.f32.partialorder %v555_v9, 0.0 }
  0x39   : > { %v564_v10 = vand.u32 2147483647, %v563_v7  ;;  %v556_v13 = vsel %vm338_vm2, 1.0, %v673_v12  ;;  %v347_v14 = vsel %vm338_vm2, 0.35, %v673_v12  ;;  %vm350_vm3 = vmor %vm338_vm2, %vm349_vm0 }
  0x3a   : > { %v345_v16 = vsub.f32 %v336_v6, %v556_v13  ;;  %348 = vst [vmem:[%s319_s20] sm:$0xff] %v347_v14  ;;  %v557_v17 = vsel %vm350_vm3, 1.0, %v673_v12 }
  0x3b   : > { %v566_v11 = vor.u32 %v565_v8, %v564_v10  ;;  %v353_v19 = vrot.slane %v557_v17, 4 }
  0x3c   : > { %346 = vst [vmem:[%s323_s28] sm:$0xff] %v345_v16 }
  0x3d   : > { %v567_v15 = vsel %vm561_vm1, %v566_v11, %v341_v2  ;;  %v354_v20 = vmax.f32 %v557_v17, %v353_v19 }
  0x3e   : > { %v343_v18 = vadd.f32 %v567_v15, %v556_v13 }
  0x3f   : > { %v355_v21 = vrot.slane %v354_v20, 2 }
  0x40   : > { %344 = vst [vmem:[%s327_s9] sm:$0xff] %v343_v18 }
  0x41   : > { %v356_v22 = vmax.f32 %v354_v20, %v355_v21 }
  0x43   : > { %v357_v23 = vrot.slane %v356_v22, 1 }
  0x45   : > { %v358_v24 = vmax.f32 %v356_v22, %v357_v23 }
  0x47   : > { %359 = vst [vmem:[%s331_s13] sm:$0xff] %v358_v24 }
  0x48 PF: > { %p17_p8 = scmp.ge.s32.totalorder %s731_s26, 4   ;;  %s845_s21 = smov %s662_s22 }
  0x49   : > { %s846_s22 = smov %s666_s23  ;;  %s847_s23 = smov %s741_s29 }
  0x4a   : > { %s848_s24 = smov %s731_s26  ;;  %19 = sbr.rel (!%p17_p8) target bundleno = 3 (0x3), region = 114 }
  0x4f   :  { %421 = vsyncpa [#allocation3], 1 }
  0x50   :  { %423 = vsyncpa [#allocation3 + $0x1], 1 }

</bundles_post_ra>
